<compile_context>
chip_gen: v7x
topology: tpu7x:2x2x1
jax: 0.10.0
libtpu: 0.0.40
codegen_flags: <defaults>
</compile_context>

<pallas_src>
import jax
import jax.numpy as jnp
from jax.experimental import pallas as pl
from jax.experimental.pallas import tpu as pltpu

# Module constants (from the PyTorch file)
N1 = 10
N2 = 120
N3 = 2
K = N2 * N3  # 240

DEFAULT_TB = 128  # samples per grid step; see VMEM sizing note above


def temporal_kernel(x_ref, fcw_ref, outw_ref, fcb_ref, out_ref):
    """Batched body: TB samples per grid step, everything resident in VMEM.

    x_ref    : (TB, N1, K)  input samples for this grid step
    fcw_ref  : (1, K)       fc1 weight as a lane-dense row vector
    outw_ref : (1, N1)      fc1(W) + b, precomputed (batch-invariant, hoisted)
    fcb_ref  : (1, 1)       fc1 bias scalar (SMEM)
    out_ref  : (TB, N1, K)  rept^T for these samples (lane-dense output)
    """
    x = x_ref[...].astype(jnp.float32)            # (TB, N1, K)
    fcw = fcw_ref[...].reshape(1, 1, K)           # (1, 1, K)  -- free reshape
    out_w = outw_ref[...].reshape(1, 1, N1)       # (1, 1, N1)
    b = fcb_ref[0, 0]

    # fc1(x): VPU broadcast-multiply + XLU cross-lane reduce over all TB*N1 rows.
    out_x = jnp.sum(x * fcw, axis=-1, keepdims=True) + b      # (TB, N1, 1)

    # energy^T[b, j, i] = out_x[b, j] * out_W[i]: rank-1 outer product on the VPU.
    energy_t = out_x * out_w                                   # (TB, N1, N1)

    # torch Softmax(dim=1) normalizes over the FIRST N1 axis (index i) of the
    # (1, N1, N1) energy, which is the LAST axis of energy^T.
    m = jnp.max(energy_t, axis=-1, keepdims=True)
    e = jnp.exp(energy_t - m)
    denom = jnp.sum(e, axis=-1, keepdims=True)
    attention_t = e * pl.reciprocal(denom, approx=True)        # EUP slot (~free)

    # rept^T[b] = attention^T[b] @ x[b]: one batched MXU pass over the TB tile,
    # lane-dense stores to the (TB, N1, K) output, no in-kernel transpose of x.
    out_ref[...] = jnp.einsum(
        "bji,bik->bjk", attention_t, x,
        preferred_element_type=jnp.float32).astype(out_ref.dtype)


def prepare_params(W, fc1_weight, fc1_bias):
    """One-time parameter prep, hoisted out of every forward call."""
    W2d = W.reshape(N1, K).astype(jnp.float32)                 # (N1, K)
    fcw_row = fc1_weight.reshape(1, K).astype(jnp.float32)     # (1, K) row vector
    fcb = fc1_bias.reshape(1, 1).astype(jnp.float32)           # (1, 1) SMEM scalar
    # Batch-invariant fc1(W) + b, precomputed so W never enters the kernel.
    out_w_row = (W2d @ fcw_row.T + fcb[0, 0]).reshape(1, N1)   # (1, N1)
    return fcw_row, out_w_row, fcb


def _choose_tb(batch):
    """Pick the per-step sample tile.

    - tiny batches run in a single step (overhead is negligible overall)
    - batches >= 16 get at least 2 grid steps so both v7x TensorCores work
    - capped at DEFAULT_TB=128 so double-buffered in+out pipeline buffers
      (4 * TB * 16 KiB) stay within every generation's VMEM budget.
    """
    if batch <= 1:
        return 1
    if batch < 16:
        return batch
    return min(DEFAULT_TB, (batch + 1) // 2)


def _pallas_rept_t(x_b, fcw_row, out_w_row, fcb, *, tb=None):
    """x_b: (B, N1, K) float array. Returns rept^T per sample: (B, N1, K) f32."""
    batch = x_b.shape[0]
    if tb is None:
        tb = _choose_tb(batch)
    nb = pl.cdiv(batch, tb)
    bp = nb * tb
    if bp != batch:
        # Zero-pad the batch to a multiple of TB. Zero samples are numerically
        # harmless (softmax of a constant row, matmul against zeros) and the
        # padded outputs are sliced off below.
        x_b = jnp.pad(x_b, ((0, bp - batch), (0, 0), (0, 0)))

    out = pl.pallas_call(
        temporal_kernel,
        out_shape=jax.ShapeDtypeStruct((bp, N1, K), jnp.float32),
        grid=(nb,),
        in_specs=[
            pl.BlockSpec((tb, N1, K), lambda bi: (bi, 0, 0)),  # x tile
            pl.BlockSpec((1, K), lambda bi: (0, 0)),           # fc1 weight row
            pl.BlockSpec((1, N1), lambda bi: (0, 0)),          # hoisted fc1(W)+b
            pl.BlockSpec(memory_space=pltpu.SMEM),             # fc1 bias scalar
        ],
        out_specs=pl.BlockSpec((tb, N1, K), lambda bi: (bi, 0, 0)),
        compiler_params=pltpu.CompilerParams(
            dimension_semantics=("parallel",),       # megacore / dual-TC on v7x
            vmem_limit_bytes=32 * 1024 * 1024,       # lift v5e's 16 MiB default
        ),
    )(x_b, fcw_row, out_w_row, fcb)
    return out[:batch] if bp != batch else out


def temporal_neural_net_forward(x, fcw_row, out_w_row, fcb):
    """Module-faithful forward: x (N1, N2, N3) -> rept (N1, N2, N3)."""
    x_b = x.reshape(1, N1, K)
    rept_t = _pallas_rept_t(x_b, fcw_row, out_w_row, fcb)[0]   # (N1, K) == rept^T
    # Tiny (10, 240) transpose in XLA to reproduce torch's exact layout:
    # rept is (K, N1) row-major reinterpreted as (N1, N2, N3).
    return rept_t.T.reshape(N1, N2, N3)


def temporal_neural_net_forward_batched(x_batch, fcw_row, out_w_row, fcb,
                                        *, tb=None, module_layout=False):
    """Batched forward: x_batch (B, N1, N2, N3).

    Default return is the lane-dense (B, N1, K) rept^T (no extra HBM round trip
    for an output transpose).  Set module_layout=True to get torch's
    (B, N1, N2, N3) layout (costs one extra read+write of the output in XLA).
    """
    batch = x_batch.shape[0]
    x_b = x_batch.reshape(batch, N1, K)        # free reshape (contiguous)
    rept_t = _pallas_rept_t(x_b, fcw_row, out_w_row, fcb, tb=tb)   # (B, N1, K)
    if module_layout:
        return jnp.transpose(rept_t, (0, 2, 1)).reshape(batch, N1, N2, N3)
    return rept_t


def _reference_rept_t(x, W, fc1_weight, fc1_bias):
    """Pure-JAX reference mirroring the torch code; returns rept^T (N1, K)."""
    x2d = x.reshape(N1, K).astype(jnp.float32)
    W2d = W.reshape(N1, K).astype(jnp.float32)
    out_W = W2d @ fc1_weight.T + fc1_bias        # (N1, 1)
    out_x = x2d @ fc1_weight.T + fc1_bias        # (N1, 1)
    energy = out_W @ out_x.T                     # (N1, N1)
    attention = jax.nn.softmax(energy, axis=0)   # torch Softmax(dim=1) on (1,N1,N1)
    rept = x2d.T @ attention                     # (K, N1)
    return rept.T                                # (N1, K) == rept^T


def _reference_forward(x, W, fc1_weight, fc1_bias):
    return _reference_rept_t(x, W, fc1_weight, fc1_bias).T.reshape(N1, N2, N3)


if __name__ == "__main__":
    key = jax.random.PRNGKey(0)
    k_x, k_xb, k_w, k_fw, k_fb = jax.random.split(key, 5)

    # Deterministic "parameters" (torch.rand -> uniform [0,1); Linear default init)
    W = jax.random.uniform(k_w, (N1, N2, N3), dtype=jnp.float32)
    bound = 1.0 / (K ** 0.5)
    fc1_weight = jax.random.uniform(k_fw, (1, K), minval=-bound, maxval=bound,
                                    dtype=jnp.float32)
    fc1_bias = jax.random.uniform(k_fb, (1,), minval=-bound, maxval=bound,
                                  dtype=jnp.float32)

    # One-time parameter prep (flatten/cast + hoisted fc1(W)).
    fcw_row, out_w_row, fcb = prepare_params(W, fc1_weight, fc1_bias)

    # --- single-sample forward (exactly the torch module's signature) ---
    x = jax.random.normal(k_x, (N1, N2, N3), dtype=jnp.float32)
    out = jax.block_until_ready(temporal_neural_net_forward(x, fcw_row, out_w_row, fcb))
    ref = _reference_forward(x, W, fc1_weight, fc1_bias)
    assert out.shape == (N1, N2, N3)
    # approx=True reciprocal (EUP) has ~2^-12 relative error -> relaxed tolerance.
    assert jnp.allclose(out, ref, atol=2e-3, rtol=2e-3), "single-sample mismatch"

    # --- batched forward: default tb gives a 2-step "parallel" grid for B=20 ---
    B = 20
    x_batch = jax.random.normal(k_xb, (B, N1, N2, N3), dtype=jnp.float32)
    rept_t_b = jax.block_until_ready(
        temporal_neural_net_forward_batched(x_batch, fcw_row, out_w_row, fcb))
    ref_t_b = jax.vmap(
        lambda xx: _reference_rept_t(xx, W, fc1_weight, fc1_bias))(x_batch)
    assert rept_t_b.shape == (B, N1, K)
    assert jnp.allclose(rept_t_b, ref_t_b, atol=2e-3, rtol=2e-3), "batched mismatch"

    # --- exercise the batch-padding path (explicit tile that doesn't divide B) ---
    rept_t_pad = jax.block_until_ready(
        temporal_neural_net_forward_batched(x_batch, fcw_row, out_w_row, fcb, tb=16))
    assert jnp.allclose(rept_t_pad, ref_t_b, atol=2e-3, rtol=2e-3), "padded-batch mismatch"

    # --- optional module-faithful layout for consumers that need torch's shape ---
    out_b = jax.block_until_ready(temporal_neural_net_forward_batched(
        x_batch, fcw_row, out_w_row, fcb, module_layout=True))
    ref_b = jax.vmap(
        lambda xx: _reference_forward(xx, W, fc1_weight, fc1_bias))(x_batch)
    assert out_b.shape == (B, N1, N2, N3)
    assert jnp.allclose(out_b, ref_b, atol=2e-3, rtol=2e-3), "module-layout mismatch"

    print("KERNEL_OK")
</pallas_src>

<mosaic_0001>
module attributes {stable_mosaic.version = 11 : i64} {
  func.func @temporal_kernel(%arg0: i32, %arg1: memref<1x10x240xf32, #tpu.memory_space<vmem>>, %arg2: memref<1x240xf32, #tpu.memory_space<vmem>>, %arg3: memref<1x10xf32, #tpu.memory_space<vmem>>, %arg4: memref<1x1xf32, #tpu.memory_space<smem>>, %arg5: memref<1x10x240xf32, #tpu.memory_space<vmem>>) attributes {dimension_semantics = [#tpu.dimension_semantics<parallel>], iteration_bounds = array<i64: 1>, scalar_prefetch = 0 : i64, scratch_operands = 0 : i64, tpu.core_type = #tpu.core_type<tc>, window_params = [{transform_indices = @transform_0, window_bounds = array<i64: 1, 10, 240>}, {pipeline_mode = #tpu.pipeline_mode<synchronous>, transform_indices = @transform_1, window_bounds = array<i64: 1, 240>}, {pipeline_mode = #tpu.pipeline_mode<synchronous>, transform_indices = @transform_2, window_bounds = array<i64: 1, 10>}, {transform_indices = @transform_3, window_bounds = array<i64: 1, 1>}, {transform_indices = @transform_4, window_bounds = array<i64: 1, 10, 240>}]} {
    %c0 = arith.constant 0 : index
    %c0_0 = arith.constant 0 : index
    %c0_1 = arith.constant 0 : index
    %0 = vector.load %arg1[%c0, %c0_0, %c0_1] : memref<1x10x240xf32, #tpu.memory_space<vmem>>, vector<1x10x240xf32>
    %c0_2 = arith.constant 0 : index
    %c0_3 = arith.constant 0 : index
    %1 = vector.load %arg2[%c0_2, %c0_3] : memref<1x240xf32, #tpu.memory_space<vmem>>, vector<1x240xf32>
    %2 = vector.shape_cast %1 : vector<1x240xf32> to vector<1x1x240xf32>
    %c0_4 = arith.constant 0 : index
    %c0_5 = arith.constant 0 : index
    %3 = vector.load %arg3[%c0_4, %c0_5] : memref<1x10xf32, #tpu.memory_space<vmem>>, vector<1x10xf32>
    %4 = vector.shape_cast %3 : vector<1x10xf32> to vector<1x1x10xf32>
    %c0_6 = arith.constant 0 : index
    %c0_7 = arith.constant 0 : index
    %5 = memref.load %arg4[%c0_6, %c0_7] : memref<1x1xf32, #tpu.memory_space<smem>>
    %6 = vector.broadcast %2 : vector<1x1x240xf32> to vector<1x10x240xf32>
    %7 = arith.mulf %0, %6 : vector<1x10x240xf32>
    %cst = arith.constant dense<0.000000e+00> : vector<1x10xf32>
    %8 = vector.multi_reduction <add>, %7, %cst [2] : vector<1x10x240xf32> to vector<1x10xf32>
    %9 = vector.shape_cast %8 : vector<1x10xf32> to vector<1x10x1xf32>
    %10 = vector.broadcast %5 : f32 to vector<1x10x1xf32>
    %11 = arith.addf %9, %10 : vector<1x10x1xf32>
    %12 = vector.broadcast %11 : vector<1x10x1xf32> to vector<1x10x10xf32>
    %13 = vector.broadcast %4 : vector<1x1x10xf32> to vector<1x10x10xf32>
    %14 = arith.mulf %12, %13 : vector<1x10x10xf32>
    %cst_8 = arith.constant dense<0xFF800000> : vector<1x10xf32>
    %15 = vector.multi_reduction <maximumf>, %14, %cst_8 [2] : vector<1x10x10xf32> to vector<1x10xf32>
    %16 = vector.shape_cast %15 : vector<1x10xf32> to vector<1x10x1xf32>
    %17 = vector.broadcast %16 : vector<1x10x1xf32> to vector<1x10x10xf32>
    %18 = arith.subf %14, %17 : vector<1x10x10xf32>
    %19 = math.exp %18 : vector<1x10x10xf32>
    %cst_9 = arith.constant dense<0.000000e+00> : vector<1x10xf32>
    %20 = vector.multi_reduction <add>, %19, %cst_9 [2] : vector<1x10x10xf32> to vector<1x10xf32>
    %21 = vector.shape_cast %20 : vector<1x10xf32> to vector<1x10x1xf32>
    %22 = tpu.reciprocal %21 {approx = true} : vector<1x10x1xf32> -> vector<1x10x1xf32>
    %23 = vector.broadcast %22 : vector<1x10x1xf32> to vector<1x10x10xf32>
    %24 = arith.mulf %19, %23 : vector<1x10x10xf32>
    "tpu.trace_start"() <{level = 10 : i32, message = "bji,bik->bjk"}> : () -> ()
    %cst_10 = arith.constant dense<0.000000e+00> : vector<1x10x240xf32>
    %25 = tpu.matmul %24, %0, %cst_10 {dimension_numbers = #tpu.dot_dimension_numbers<[2], [1], [1], [2], [0, 0, 0, 1, 1, 2], [0], [0]>} : vector<1x10x10xf32>, vector<1x10x240xf32>, vector<1x10x240xf32> -> vector<1x10x240xf32>
    "tpu.trace_stop"() : () -> ()
    %c0_11 = arith.constant 0 : index
    %c0_12 = arith.constant 0 : index
    %c0_13 = arith.constant 0 : index
    %26 = vector.load %arg5[%c0_11, %c0_12, %c0_13] : memref<1x10x240xf32, #tpu.memory_space<vmem>>, vector<1x10x240xf32>
    tpu.vector_store %arg5[%c0_11, %c0_12, %c0_13], %25 {strides = array<i32>} : memref<1x10x240xf32, #tpu.memory_space<vmem>>, vector<1x10x240xf32>,
    return
  }
  func.func @transform_0(%arg0: i32) -> (i32, i32, i32) {
    %c0_i32 = arith.constant 0 : i32
    %c0_i32_0 = arith.constant 0 : i32
    %c0_i32_1 = arith.constant 0 : i32
    return %arg0, %c0_i32, %c0_i32_0 : i32, i32, i32
  }
  func.func @transform_1(%arg0: i32) -> (i32, i32) {
    %c0_i32 = arith.constant 0 : i32
    %c0_i32_0 = arith.constant 0 : i32
    %c0_i32_1 = arith.constant 0 : i32
    return %c0_i32, %c0_i32_0 : i32, i32
  }
  func.func @transform_2(%arg0: i32) -> (i32, i32) {
    %c0_i32 = arith.constant 0 : i32
    %c0_i32_0 = arith.constant 0 : i32
    %c0_i32_1 = arith.constant 0 : i32
    return %c0_i32, %c0_i32_0 : i32, i32
  }
  func.func @transform_3(%arg0: i32) -> (i32, i32) {
    %c0_i32 = arith.constant 0 : i32
    %c0_i32_0 = arith.constant 0 : i32
    %c0_i32_1 = arith.constant 0 : i32
    return %c0_i32, %c0_i32_0 : i32, i32
  }
  func.func @transform_4(%arg0: i32) -> (i32, i32, i32) {
    %c0_i32 = arith.constant 0 : i32
    %c0_i32_0 = arith.constant 0 : i32
    %c0_i32_1 = arith.constant 0 : i32
    return %arg0, %c0_i32, %c0_i32_0 : i32, i32, i32
  }
}

</mosaic_0001>

<bundles_post_ra>
// kernel: tpu_custom_call.1
= control target key start
LH: loop header
LB: loop body
LE: loop exit
PB: predicated region body
PF: predicated region fallthrough
CT: control target
= control target key end

     0   :  { %v26_v0 = vlaneseq  ;;  %vm40_vm0 = vcmask 916480   ;;  %vm45_vm1 = vcmask 1041408   ;;  %vm47_vm2 = vcmask 910336   ;;  %s279_s1 = inlined_call_operand.vmem [shape: f32[1,240], index: 1, kind: input, shape index: {}]   ;;  %s280_s0 = inlined_call_operand.vmem [shape: f32[1,10,240], index: 0, kind: input, shape index: {}]   ;;  %s281_s3 = inlined_call_operand.<no memory space> [shape: f32[1,1], index: 3, kind: input, shape index: {}]   ;;  %s282_s2 = inlined_call_operand.vmem [shape: f32[1,10], index: 2, kind: input, shape index: {}]   ;;  %s283_s4 = inlined_call_operand.vmem [shape: f32[1,10,240], index: 4, kind: output, shape index: {}]  }
   0x1   :  { %v22_v2 = vld [vmem:[%s279_s1] sm:$0x3]  ;;  %v19_v6 = vld [vmem:[%s280_s0 + $0x8] sm:$0xff]  ;;  %v20_v7 = vld [vmem:[%s280_s0 + $0x10] sm:$0x3]  ;;  %v52_v20 = vstv %s281_s3  ;;  %vm63_vm3 = vcmask 80896  }
   0x2   :  { %v27_v1 = vshrl.u32 %v26_v0, 7  ;;  %v18_v3 = vld [vmem:[%s280_s0] sm:$0xff]  ;;  %v21_v8 = vld [vmem:[%s280_s0 + $0x18] sm:$0x3]  ;;  %vm67_vm4 = vcmask 74752   ;;  %vm207_vm5 = vmmov 1  }
   0x3   :  { %v184_v22 = vld [vmem:[%s282_s2] ss:$0 sm:$0xff]  ;;  %v189_v40 = vpack.c.bf16 %v21_v8, %v19_v6  ;;  %v192_v41 = vpack.c.bf16 %v20_v7, %v18_v3  ;;  %vm190_vm6 = vmpackc.low %vm45_vm1, %vm207_vm5  ;;  %v208_v42 = vmov 0.0  }
   0x4   :  { %v28_v4 = vsub.s32 0, %v27_v1  ;;  %v32_v5 = vsub.s32 1, %v27_v1  ;;  %163 = vmatprep.mubr.f32.mxu0 %v208_v42  ;;  %169 = vmatprep.mubr.f32.mxu1 %v208_v42 }
   0x5   :  { %191 = vmatprep.subr.msk.bf16.mxu0 %vm190_vm6, %v189_v40  ;;  %195 = vmatprep.subr.msk.bf16.mxu1 %vm190_vm6, %v189_v40 }
   0x6   :  { %v29_v9 = vrot.slane %v22_v2, %v28_v4  ;;  %v33_v10 = vrot.slane %v22_v2, %v32_v5  ;;  %194 = vmatpush1.bf16.msk.msra.mxu0 %vm190_vm6, %v192_v41  ;;  %196 = vmatpush1.bf16.msk.msra.mxu1 %vm190_vm6, %v192_v41 }
   0x8   :  { %v36_v11 = vmul.f32 %v29_v9, %v18_v3  ;;  %v37_v12 = vmul.f32 %v33_v10, %v19_v6  ;;  %v38_v13 = vmul.f32 %v29_v9, %v20_v7  ;;  %v39_v14 = vmul.f32 %v33_v10, %v21_v8 }
   0xa   :  { %v41_v15 = vsel %vm40_vm0, %v37_v12, 0.0  ;;  %v46_v16 = vsel %vm45_vm1, %v38_v13, 0.0  ;;  %v48_v17 = vsel %vm47_vm2, %v39_v14, 0.0 }
   0xb   :  { %v42_v18 = vadd.f32 %v41_v15, %v36_v11  ;;  %v49_v19 = vadd.f32 %v48_v17, %v46_v16 }
   0xd   :  { %43 = vadd.xlane.f32.xlu0 %v42_v18 }
  0x11   :  { %50 = vadd.xlane.f32.xlu0 %v49_v19 }
  0x9a   :  { %v44_v21 = vpop.xlane.xlu0 %43 }
  0x9b   :  { %v53_v23 = vadd.f32 %v52_v20, %v44_v21 }
  0x9d   :  { %v61_v24 = vmul.f32 %v184_v22, %v53_v23 }
  0x9e   :  { %v51_v25 = vpop.xlane.xlu0 %50 }
  0x9f   :  { %v54_v26 = vadd.f32 %v52_v20, %v51_v25  ;;  %v64_v27 = vsel %vm63_vm3, %v61_v24, -inf }
  0xa0   :  { %65 = vmax.xlane.f32.xlu1 %v64_v27 }
  0xa1   :  { %v62_v28 = vmul.f32 %v184_v22, %v54_v26 }
  0xa3   :  { %v68_v29 = vsel %vm67_vm4, %v62_v28, -inf }
  0xa4   :  { %69 = vmax.xlane.f32.xlu1 %v68_v29 }
 0x12d   :  { %v66_v30 = vpop.xlane.xlu1 %65 }
 0x12e   :  { %v71_v31 = vsub.f32 %v61_v24, %v66_v30 }
 0x130   :  { %v73_v32 = vmul.f32 1.442695, %v71_v31 }
 0x131   :  { %v70_v33 = vpop.xlane.xlu1 %69 }
 0x132   :  { %199 = vpow2.f32 %v73_v32  ;;  %v72_v34 = vsub.f32 %v62_v28, %v70_v33 }
 0x134   :  { %v75_v35 = vmul.f32 1.442695, %v72_v34 }
 0x136   :  { %201 = vpow2.f32 %v75_v35 }
 0x13c   :  { %v200_v36 = vpop.eup %199 }
 0x13d   :  { %v77_v37 = vsel %vm63_vm3, %v200_v36, 0.0 }
 0x13e   :  { %78 = vadd.xlane.f32.xlu0 %v77_v37 }
 0x140   :  { %v202_v38 = vpop.eup %201 }
 0x141   :  { %v80_v39 = vsel %vm67_vm4, %v202_v38, 0.0 }
 0x142   :  { %81 = vadd.xlane.f32.xlu1 %v80_v39 }
 0x1cb   :  { %v79_v43 = vpop.xlane.xlu0 %78 }
 0x1cc   :  { %203 = vrcp.f32 %v79_v43 }
 0x1cf   :  { %v82_v44 = vpop.xlane.xlu1 %81 }
 0x1d0   :  { %205 = vrcp.f32 %v82_v44 }
 0x1d6   :  { %v204_v45 = vpop.eup %203 }
 0x1d7   :  { %v85_v46 = vmul.f32 %v204_v45, %v200_v36 }
 0x1d9   :  { %187 = vmatmul.mubr.msk.f32.vlgmr.msra.gmra.mrb[0].mxu0 %vm63_vm3, %v85_v46 }
 0x1da   :  { %v206_v47 = vpop.eup %205 }
 0x1db   :  { %v86_v48 = vmul.f32 %v206_v47, %v202_v38 }
 0x1dd   :  { %188 = vmatmul.mubr.msk.f32.vlgmr.msra.gmra.mrb[0].mxu1 %vm63_vm3, %v86_v48 }
 0x2ac   :  { %v165_v49 = vpop.f32.mrb[0].mxu0 }
 0x2ad   :  { %176 = vst [vmem:[%s283_s4] sm:$0xff] %v165_v49  ;;  %v167_v50 = vpop.f32.mrb[1].mxu0 }
 0x2ae   :  { %177 = vst.msk [vmem:[%s283_s4 + $0x8] sm:$0xff] %vm40_vm0, %v167_v50 }
 0x2b0   :  { %v171_v51 = vpop.f32.mrb[0].mxu1 }
 0x2b1   :  { %178 = vst [vmem:[%s283_s4 + $0x10] sm:$0x3] %v171_v51  ;;  %v173_v52 = vpop.f32.mrb[1].mxu1 }
 0x2b2   :  { %179 = vst.msk [vmem:[%s283_s4 + $0x18] sm:$0x3] %vm47_vm2, %v173_v52 }

</bundles_post_ra>
